<compile_context>
chip_gen: v7x
topology: tpu7x:2x2x1
jax: 0.10.0
libtpu: 0.0.40
codegen_flags: <defaults>
</compile_context>

<pallas_src>
import functools
import math

import jax
import jax.numpy as jnp
from jax.experimental import pallas as pl
from jax.experimental.pallas import tpu as pltpu


def _unet_block_kernel(x1_ref, w1_ref, b1_ref, w2_ref, b2_ref, mask_ref,
                       o_ref, mid_ref, col_ref, *, Wp, PADL):
    """Fused conv3x3 -> ReLU -> conv3x3 -> ReLU for one image (channels-first).

    x1_ref:   (9*Cin, n_out)  bf16  wrapper-side im2col of the padded input
    w1_ref:   (Cmid, 9*Cin)   bf16  tap-major conv1 weights
    b1_ref:   (Cmid, 1)       f32
    w2_ref:   (Cout, 9*Cmid)  bf16  tap-major conv2 weights
    b2_ref:   (Cout, 1)       f32
    mask_ref: (1, n_out)      f32   1.0 where (p % Wp) < W else 0.0
    o_ref:    (Cout, n_out)         output on the (H, Wp) wrap grid
    mid_ref:  (Cmid, n_out + 2*PADL) bf16  zero-padded conv1 activation
    col_ref:  (9*Cmid, n_out) bf16  conv2 im2col (taps stacked along K)
    """
    n_out = o_ref.shape[-1]
    cmid = mid_ref.shape[0]

    # ---- conv1: one GEMM (K = 9*Cin) + bias + ReLU + wrap-column mask -----
    a1 = jnp.dot(w1_ref[...], x1_ref[...], preferred_element_type=jnp.float32)
    a1 = jnp.maximum(a1 + b1_ref[...], 0.0) * mask_ref[...]

    # ---- stage the zero-padded activation (interior lane-aligned at PADL) -
    zpad = jnp.zeros((cmid, PADL), dtype=mid_ref.dtype)
    mid_ref[:, :PADL] = zpad                      # left pad strip (aligned)
    mid_ref[:, PADL + n_out:] = zpad              # right pad strip (aligned)
    mid_ref[:, PADL:PADL + n_out] = a1.astype(mid_ref.dtype)   # aligned store

    # ---- conv2 im2col: 9 shifted lane-slices stacked along the K axis -----
    # (static lane-offset loads; stores into col_ref are fully aligned)
    for dy in range(3):
        for dx in range(3):
            k = dy * 3 + dx
            s = PADL - (Wp + 1) + dy * Wp + dx
            col_ref[k * cmid:(k + 1) * cmid, :] = mid_ref[:, s:s + n_out]

    # ---- conv2: one GEMM (K = 9*Cmid) + bias + ReLU, lane-dense store -----
    a2 = jnp.dot(w2_ref[...], col_ref[...], preferred_element_type=jnp.float32)
    o_ref[...] = jnp.maximum(a2 + b2_ref[...], 0.0).astype(o_ref.dtype)


def unet_block_forward(x, w1, b1, w2, b2):
    """Pallas implementation of UnetBlock.forward.

    x:  (B, Cin, H, W)     NCHW (PyTorch layout)
    w1: (Cmid, Cin, 3, 3)  OIHW, b1: (Cmid,)
    w2: (Cout, Cmid, 3, 3) OIHW, b2: (Cout,)
    returns (B, Cout, H, W)
    """
    B, Cin, H, W = x.shape
    Cmid = w1.shape[0]
    Cout = w2.shape[0]
    assert w1.shape == (Cmid, Cin, 3, 3)
    assert w2.shape == (Cout, Cmid, 3, 3)

    # Padded width: >= W+2 (1 left pad, >=1 right pad, wrap slack); round up so
    # n_out = H*Wp is a multiple of 128 (fully lane-dense stores) when cheap.
    Wp = W + 2
    step = 128 // math.gcd(H, 128)
    Wp_dense = ((Wp + step - 1) // step) * step
    if Wp_dense - Wp <= 16:
        Wp = Wp_dense
    n_out = H * Wp
    Lp = (H + 3) * Wp                           # 1 top + 2 bottom pad rows
    PADL = ((Wp + 1 + 127) // 128) * 128        # aligned interior offset in scratch

    # --- wrapper-side layout plumbing (cheap XLA work, no kernel reshapes) --
    # NCHW -> zero-padded channels-first flat spatial (B, Cin, Lp).
    xp = jnp.pad(x, ((0, 0), (0, 0), (1, 2), (1, Wp - W - 1)))
    xpf = xp.reshape(B, Cin, Lp)
    # im2col for conv1: K = 9*Cin along the sublane axis, tap-major.
    offs = [dy * Wp + dx for dy in range(3) for dx in range(3)]
    rhs1 = jnp.concatenate([xpf[:, :, s:s + n_out] for s in offs], axis=1)
    rhs1 = rhs1.astype(jnp.bfloat16)                       # (B, 9*Cin, n_out)

    # OIHW -> tap-major GEMM weights (bf16 for the MXU), biases as columns.
    w1m = w1.transpose(0, 2, 3, 1).reshape(Cmid, 9 * Cin).astype(jnp.bfloat16)
    w2m = w2.transpose(0, 2, 3, 1).reshape(Cout, 9 * Cmid).astype(jnp.bfloat16)
    b1c = b1.reshape(Cmid, 1).astype(jnp.float32)
    b2c = b2.reshape(Cout, 1).astype(jnp.float32)

    # Wrap-column mask: zero conv1 outputs at junk columns w >= W of the
    # (H, Wp) wrap grid so they act as conv2's left/right zero padding.
    mask = ((jnp.arange(n_out, dtype=jnp.int32) % Wp) < W)
    mask = mask.astype(jnp.float32).reshape(1, n_out)

    kernel = functools.partial(_unet_block_kernel, Wp=Wp, PADL=PADL)

    out = pl.pallas_call(
        kernel,
        out_shape=jax.ShapeDtypeStruct((B, Cout, n_out), x.dtype),
        grid_spec=pltpu.PrefetchScalarGridSpec(
            num_scalar_prefetch=0,
            grid=(B,),
            in_specs=[
                pl.BlockSpec((None, 9 * Cin, n_out), lambda b: (b, 0, 0)),
                pl.BlockSpec((Cmid, 9 * Cin), lambda b: (0, 0)),
                pl.BlockSpec((Cmid, 1), lambda b: (0, 0)),
                pl.BlockSpec((Cout, 9 * Cmid), lambda b: (0, 0)),
                pl.BlockSpec((Cout, 1), lambda b: (0, 0)),
                pl.BlockSpec((1, n_out), lambda b: (0, 0)),
            ],
            out_specs=pl.BlockSpec((None, Cout, n_out), lambda b: (b, 0, 0)),
            scratch_shapes=[
                pltpu.VMEM((Cmid, n_out + 2 * PADL), jnp.bfloat16),
                pltpu.VMEM((9 * Cmid, n_out), jnp.bfloat16),
            ],
        ),
        compiler_params=pltpu.CompilerParams(
            dimension_semantics=("parallel",),
            vmem_limit_bytes=32 * 1024 * 1024,   # explicit, well under v7x 64 MiB
        ),
    )(rhs1, w1m, b1c, w2m, b2c, mask)

    # Crop the wrap-junk columns (w >= W); channels-first is already NCHW.
    return out.reshape(B, Cout, H, Wp)[:, :, :, :W]


if __name__ == "__main__":
    # Small config consistent with UnetBlock(input_dim=4, output_dim=32).
    B, Cin, H, W = 2, 4, 16, 16
    Cout = 32

    key = jax.random.PRNGKey(0)
    kx, kw1, kb1, kw2, kb2 = jax.random.split(key, 5)
    x = jax.random.normal(kx, (B, Cin, H, W), dtype=jnp.float32)
    w1 = jax.random.normal(kw1, (Cout, Cin, 3, 3), dtype=jnp.float32) * 0.1
    b1 = jax.random.normal(kb1, (Cout,), dtype=jnp.float32) * 0.1
    w2 = jax.random.normal(kw2, (Cout, Cout, 3, 3), dtype=jnp.float32) * 0.1
    b2 = jax.random.normal(kb2, (Cout,), dtype=jnp.float32) * 0.1

    y = jax.block_until_ready(unet_block_forward(x, w1, b1, w2, b2))

    # Pure-JAX f32 reference: Conv2d(3x3, pad=1) -> ReLU -> Conv2d -> ReLU.
    def conv2d_nchw(inp, w, b):
        out = jax.lax.conv_general_dilated(
            inp, w, window_strides=(1, 1), padding=((1, 1), (1, 1)),
            dimension_numbers=("NCHW", "OIHW", "NCHW"))
        return out + b.reshape(1, -1, 1, 1)

    ref = jnp.maximum(conv2d_nchw(x, w1, b1), 0.0)
    ref = jnp.maximum(conv2d_nchw(ref, w2, b2), 0.0)

    assert y.shape == (B, Cout, H, W)
    # bf16 MXU operands -> relaxed tolerance vs the pure-f32 reference.
    max_err = float(jnp.max(jnp.abs(y - ref)))
    assert max_err < 5e-2, max_err

    print("KERNEL_OK")
</pallas_src>

<mosaic_0001>
module attributes {stable_mosaic.version = 11 : i64} {
  func.func @_unet_block_kernel(%arg0: i32, %arg1: memref<1x36x384xbf16, #tpu.memory_space<vmem>>, %arg2: memref<32x36xbf16, #tpu.memory_space<vmem>>, %arg3: memref<32x1xf32, #tpu.memory_space<vmem>>, %arg4: memref<32x288xbf16, #tpu.memory_space<vmem>>, %arg5: memref<32x1xf32, #tpu.memory_space<vmem>>, %arg6: memref<1x384xf32, #tpu.memory_space<vmem>>, %arg7: memref<1x32x384xf32, #tpu.memory_space<vmem>>, %arg8: memref<32x640xbf16, #tpu.memory_space<vmem>>, %arg9: memref<288x384xbf16, #tpu.memory_space<vmem>>) attributes {dimension_semantics = [#tpu.dimension_semantics<parallel>], iteration_bounds = array<i64: 2>, scalar_prefetch = 0 : i64, scratch_operands = 2 : i64, tpu.core_type = #tpu.core_type<tc>, window_params = [{transform_indices = @transform_0, window_bounds = array<i64: 1, 36, 384>}, {pipeline_mode = #tpu.pipeline_mode<synchronous>, transform_indices = @transform_1, window_bounds = array<i64: 32, 36>}, {pipeline_mode = #tpu.pipeline_mode<synchronous>, transform_indices = @transform_2, window_bounds = array<i64: 32, 1>}, {pipeline_mode = #tpu.pipeline_mode<synchronous>, transform_indices = @transform_3, window_bounds = array<i64: 32, 288>}, {pipeline_mode = #tpu.pipeline_mode<synchronous>, transform_indices = @transform_4, window_bounds = array<i64: 32, 1>}, {pipeline_mode = #tpu.pipeline_mode<synchronous>, transform_indices = @transform_5, window_bounds = array<i64: 1, 384>}, {transform_indices = @transform_6, window_bounds = array<i64: 1, 32, 384>}]} {
    %c0 = arith.constant 0 : index
    %c0_0 = arith.constant 0 : index
    %0 = vector.load %arg2[%c0, %c0_0] : memref<32x36xbf16, #tpu.memory_space<vmem>>, vector<32x36xbf16>
    %c0_1 = arith.constant 0 : index
    %c0_2 = arith.constant 0 : index
    %c0_3 = arith.constant 0 : index
    %1 = vector.load %arg1[%c0_1, %c0_2, %c0_3] : memref<1x36x384xbf16, #tpu.memory_space<vmem>>, vector<1x36x384xbf16>
    %2 = vector.shape_cast %1 : vector<1x36x384xbf16> to vector<36x384xbf16>
    %cst = arith.constant dense<0.000000e+00> : vector<32x384xf32>
    %3 = tpu.matmul %0, %2, %cst {dimension_numbers = #tpu.dot_dimension_numbers<[1], [0], [0], [1], [0, 0, 1, 1], [], []>} : vector<32x36xbf16>, vector<36x384xbf16>, vector<32x384xf32> -> vector<32x384xf32>
    %c0_4 = arith.constant 0 : index
    %c0_5 = arith.constant 0 : index
    %4 = vector.load %arg3[%c0_4, %c0_5] : memref<32x1xf32, #tpu.memory_space<vmem>>, vector<32x1xf32>
    %5 = vector.broadcast %4 : vector<32x1xf32> to vector<32x384xf32>
    %6 = arith.addf %3, %5 : vector<32x384xf32>
    %cst_6 = arith.constant 0.000000e+00 : f32
    %7 = vector.broadcast %cst_6 : f32 to vector<32x384xf32>
    %8 = arith.maximumf %6, %7 : vector<32x384xf32>
    %c0_7 = arith.constant 0 : index
    %c0_8 = arith.constant 0 : index
    %9 = vector.load %arg6[%c0_7, %c0_8] : memref<1x384xf32, #tpu.memory_space<vmem>>, vector<1x384xf32>
    %10 = vector.broadcast %9 : vector<1x384xf32> to vector<32x384xf32>
    %11 = arith.mulf %8, %10 : vector<32x384xf32>
    %cst_9 = arith.constant 0.000000e+00 : bf16
    %12 = vector.broadcast %cst_9 : bf16 to vector<32x128xbf16>
    %c0_10 = arith.constant 0 : index
    %c0_11 = arith.constant 0 : index
    %13 = vector.load %arg8[%c0_10, %c0_11] : memref<32x640xbf16, #tpu.memory_space<vmem>>, vector<32x128xbf16>
    tpu.vector_store %arg8[%c0_10, %c0_11], %12 {strides = array<i32>} : memref<32x640xbf16, #tpu.memory_space<vmem>>, vector<32x128xbf16>,
    %c0_12 = arith.constant 0 : index
    %c512 = arith.constant 512 : index
    %14 = vector.load %arg8[%c0_12, %c512] : memref<32x640xbf16, #tpu.memory_space<vmem>>, vector<32x128xbf16>
    tpu.vector_store %arg8[%c0_12, %c512], %12 {strides = array<i32>} : memref<32x640xbf16, #tpu.memory_space<vmem>>, vector<32x128xbf16>,
    %15 = arith.truncf %11 : vector<32x384xf32> to vector<32x384xbf16>
    %c0_13 = arith.constant 0 : index
    %c128 = arith.constant 128 : index
    %16 = vector.load %arg8[%c0_13, %c128] : memref<32x640xbf16, #tpu.memory_space<vmem>>, vector<32x384xbf16>
    tpu.vector_store %arg8[%c0_13, %c128], %15 {strides = array<i32>} : memref<32x640xbf16, #tpu.memory_space<vmem>>, vector<32x384xbf16>,
    %c0_14 = arith.constant 0 : index
    %c103 = arith.constant 103 : index
    %17 = vector.load %arg8[%c0_14, %c103] : memref<32x640xbf16, #tpu.memory_space<vmem>>, vector<32x384xbf16>
    %c0_15 = arith.constant 0 : index
    %c0_16 = arith.constant 0 : index
    %18 = vector.load %arg9[%c0_15, %c0_16] : memref<288x384xbf16, #tpu.memory_space<vmem>>, vector<32x384xbf16>
    tpu.vector_store %arg9[%c0_15, %c0_16], %17 {strides = array<i32>} : memref<288x384xbf16, #tpu.memory_space<vmem>>, vector<32x384xbf16>,
    %c0_17 = arith.constant 0 : index
    %c104 = arith.constant 104 : index
    %19 = vector.load %arg8[%c0_17, %c104] : memref<32x640xbf16, #tpu.memory_space<vmem>>, vector<32x384xbf16>
    %c32 = arith.constant 32 : index
    %c0_18 = arith.constant 0 : index
    %20 = vector.load %arg9[%c32, %c0_18] : memref<288x384xbf16, #tpu.memory_space<vmem>>, vector<32x384xbf16>
    tpu.vector_store %arg9[%c32, %c0_18], %19 {strides = array<i32>} : memref<288x384xbf16, #tpu.memory_space<vmem>>, vector<32x384xbf16>,
    %c0_19 = arith.constant 0 : index
    %c105 = arith.constant 105 : index
    %21 = vector.load %arg8[%c0_19, %c105] : memref<32x640xbf16, #tpu.memory_space<vmem>>, vector<32x384xbf16>
    %c64 = arith.constant 64 : index
    %c0_20 = arith.constant 0 : index
    %22 = vector.load %arg9[%c64, %c0_20] : memref<288x384xbf16, #tpu.memory_space<vmem>>, vector<32x384xbf16>
    tpu.vector_store %arg9[%c64, %c0_20], %21 {strides = array<i32>} : memref<288x384xbf16, #tpu.memory_space<vmem>>, vector<32x384xbf16>,
    %c0_21 = arith.constant 0 : index
    %c127 = arith.constant 127 : index
    %23 = vector.load %arg8[%c0_21, %c127] : memref<32x640xbf16, #tpu.memory_space<vmem>>, vector<32x384xbf16>
    %c96 = arith.constant 96 : index
    %c0_22 = arith.constant 0 : index
    %24 = vector.load %arg9[%c96, %c0_22] : memref<288x384xbf16, #tpu.memory_space<vmem>>, vector<32x384xbf16>
    tpu.vector_store %arg9[%c96, %c0_22], %23 {strides = array<i32>} : memref<288x384xbf16, #tpu.memory_space<vmem>>, vector<32x384xbf16>,
    %c0_23 = arith.constant 0 : index
    %c128_24 = arith.constant 128 : index
    %25 = vector.load %arg8[%c0_23, %c128_24] : memref<32x640xbf16, #tpu.memory_space<vmem>>, vector<32x384xbf16>
    %c128_25 = arith.constant 128 : index
    %c0_26 = arith.constant 0 : index
    %26 = vector.load %arg9[%c128_25, %c0_26] : memref<288x384xbf16, #tpu.memory_space<vmem>>, vector<32x384xbf16>
    tpu.vector_store %arg9[%c128_25, %c0_26], %25 {strides = array<i32>} : memref<288x384xbf16, #tpu.memory_space<vmem>>, vector<32x384xbf16>,
    %c0_27 = arith.constant 0 : index
    %c129 = arith.constant 129 : index
    %27 = vector.load %arg8[%c0_27, %c129] : memref<32x640xbf16, #tpu.memory_space<vmem>>, vector<32x384xbf16>
    %c160 = arith.constant 160 : index
    %c0_28 = arith.constant 0 : index
    %28 = vector.load %arg9[%c160, %c0_28] : memref<288x384xbf16, #tpu.memory_space<vmem>>, vector<32x384xbf16>
    tpu.vector_store %arg9[%c160, %c0_28], %27 {strides = array<i32>} : memref<288x384xbf16, #tpu.memory_space<vmem>>, vector<32x384xbf16>,
    %c0_29 = arith.constant 0 : index
    %c151 = arith.constant 151 : index
    %29 = vector.load %arg8[%c0_29, %c151] : memref<32x640xbf16, #tpu.memory_space<vmem>>, vector<32x384xbf16>
    %c192 = arith.constant 192 : index
    %c0_30 = arith.constant 0 : index
    %30 = vector.load %arg9[%c192, %c0_30] : memref<288x384xbf16, #tpu.memory_space<vmem>>, vector<32x384xbf16>
    tpu.vector_store %arg9[%c192, %c0_30], %29 {strides = array<i32>} : memref<288x384xbf16, #tpu.memory_space<vmem>>, vector<32x384xbf16>,
    %c0_31 = arith.constant 0 : index
    %c152 = arith.constant 152 : index
    %31 = vector.load %arg8[%c0_31, %c152] : memref<32x640xbf16, #tpu.memory_space<vmem>>, vector<32x384xbf16>
    %c224 = arith.constant 224 : index
    %c0_32 = arith.constant 0 : index
    %32 = vector.load %arg9[%c224, %c0_32] : memref<288x384xbf16, #tpu.memory_space<vmem>>, vector<32x384xbf16>
    tpu.vector_store %arg9[%c224, %c0_32], %31 {strides = array<i32>} : memref<288x384xbf16, #tpu.memory_space<vmem>>, vector<32x384xbf16>,
    %c0_33 = arith.constant 0 : index
    %c153 = arith.constant 153 : index
    %33 = vector.load %arg8[%c0_33, %c153] : memref<32x640xbf16, #tpu.memory_space<vmem>>, vector<32x384xbf16>
    %c256 = arith.constant 256 : index
    %c0_34 = arith.constant 0 : index
    %34 = vector.load %arg9[%c256, %c0_34] : memref<288x384xbf16, #tpu.memory_space<vmem>>, vector<32x384xbf16>
    tpu.vector_store %arg9[%c256, %c0_34], %33 {strides = array<i32>} : memref<288x384xbf16, #tpu.memory_space<vmem>>, vector<32x384xbf16>,
    %c0_35 = arith.constant 0 : index
    %c0_36 = arith.constant 0 : index
    %35 = vector.load %arg4[%c0_35, %c0_36] : memref<32x288xbf16, #tpu.memory_space<vmem>>, vector<32x288xbf16>
    %c0_37 = arith.constant 0 : index
    %c0_38 = arith.constant 0 : index
    %36 = vector.load %arg9[%c0_37, %c0_38] : memref<288x384xbf16, #tpu.memory_space<vmem>>, vector<288x384xbf16>
    %cst_39 = arith.constant dense<0.000000e+00> : vector<32x384xf32>
    %37 = tpu.matmul %35, %36, %cst_39 {dimension_numbers = #tpu.dot_dimension_numbers<[1], [0], [0], [1], [0, 0, 1, 1], [], []>} : vector<32x288xbf16>, vector<288x384xbf16>, vector<32x384xf32> -> vector<32x384xf32>
    %c0_40 = arith.constant 0 : index
    %c0_41 = arith.constant 0 : index
    %38 = vector.load %arg5[%c0_40, %c0_41] : memref<32x1xf32, #tpu.memory_space<vmem>>, vector<32x1xf32>
    %39 = vector.broadcast %38 : vector<32x1xf32> to vector<32x384xf32>
    %40 = arith.addf %37, %39 : vector<32x384xf32>
    %cst_42 = arith.constant 0.000000e+00 : f32
    %41 = vector.broadcast %cst_42 : f32 to vector<32x384xf32>
    %42 = arith.maximumf %40, %41 : vector<32x384xf32>
    %c0_43 = arith.constant 0 : index
    %c0_44 = arith.constant 0 : index
    %c0_45 = arith.constant 0 : index
    %43 = vector.load %arg7[%c0_43, %c0_44, %c0_45] : memref<1x32x384xf32, #tpu.memory_space<vmem>>, vector<1x32x384xf32>
    %44 = vector.shape_cast %43 : vector<1x32x384xf32> to vector<32x384xf32>
    %45 = vector.shape_cast %42 : vector<32x384xf32> to vector<1x32x384xf32>
    tpu.vector_store %arg7[%c0_43, %c0_44, %c0_45], %45 {strides = array<i32>} : memref<1x32x384xf32, #tpu.memory_space<vmem>>, vector<1x32x384xf32>,
    return
  }
  func.func @transform_0(%arg0: i32) -> (i32, i32, i32) {
    %c0_i32 = arith.constant 0 : i32
    %c0_i32_0 = arith.constant 0 : i32
    %c0_i32_1 = arith.constant 0 : i32
    return %arg0, %c0_i32, %c0_i32_0 : i32, i32, i32
  }
  func.func @transform_1(%arg0: i32) -> (i32, i32) {
    %c0_i32 = arith.constant 0 : i32
    %c0_i32_0 = arith.constant 0 : i32
    %c0_i32_1 = arith.constant 0 : i32
    return %c0_i32, %c0_i32_0 : i32, i32
  }
  func.func @transform_2(%arg0: i32) -> (i32, i32) {
    %c0_i32 = arith.constant 0 : i32
    %c0_i32_0 = arith.constant 0 : i32
    %c0_i32_1 = arith.constant 0 : i32
    return %c0_i32, %c0_i32_0 : i32, i32
  }
  func.func @transform_3(%arg0: i32) -> (i32, i32) {
    %c0_i32 = arith.constant 0 : i32
    %c0_i32_0 = arith.constant 0 : i32
    %c0_i32_1 = arith.constant 0 : i32
    return %c0_i32, %c0_i32_0 : i32, i32
  }
  func.func @transform_4(%arg0: i32) -> (i32, i32) {
    %c0_i32 = arith.constant 0 : i32
    %c0_i32_0 = arith.constant 0 : i32
    %c0_i32_1 = arith.constant 0 : i32
    return %c0_i32, %c0_i32_0 : i32, i32
  }
  func.func @transform_5(%arg0: i32) -> (i32, i32) {
    %c0_i32 = arith.constant 0 : i32
    %c0_i32_0 = arith.constant 0 : i32
    %c0_i32_1 = arith.constant 0 : i32
    return %c0_i32, %c0_i32_0 : i32, i32
  }
  func.func @transform_6(%arg0: i32) -> (i32, i32, i32) {
    %c0_i32 = arith.constant 0 : i32
    %c0_i32_0 = arith.constant 0 : i32
    %c0_i32_1 = arith.constant 0 : i32
    return %arg0, %c0_i32, %c0_i32_0 : i32, i32, i32
  }
}

</mosaic_0001>

<bundles_post_ra>
// kernel: tpu_custom_call.1
= control target key start
LH: loop header
LB: loop body
LE: loop exit
PB: predicated region body
PF: predicated region fallthrough
CT: control target
= control target key end

     0   :  { %11 = vsyncpa [#allocation5], 0  ;;  %s2158_s0 = inlined_call_operand.vmem [shape: bf16[2,36,384], index: 0, kind: input, shape index: {}]   ;;  %s2159_s1 = inlined_call_operand.vmem [shape: bf16[32,36], index: 1, kind: input, shape index: {}]   ;;  %s2160_s2 = inlined_call_operand.vmem [shape: f32[32,1], index: 2, kind: input, shape index: {}]   ;;  %s2161_s3 = inlined_call_operand.vmem [shape: bf16[32,288], index: 3, kind: input, shape index: {}]   ;;  %s2162_s4 = inlined_call_operand.vmem [shape: f32[32,1], index: 4, kind: input, shape index: {}]   ;;  %s2163_s5 = inlined_call_operand.vmem [shape: f32[1,384], index: 5, kind: input, shape index: {}]   ;;  %s2164_s6 = inlined_call_operand.hbm [shape: f32[2,32,384], index: 6, kind: output, shape index: {}]  }
   0x1   :  { %13 = vsyncpa [#allocation5 + $0x1], 0  ;;  %s1688_s21 = smov 0   ;;  %s1690_s22 = smov 0  }
   0x2   :  { %s1692_s23 = smov 0   ;;  %s1694_s24 = smov 0  }
   0x3 LB: > { %s1709_s25 = sadd.s32 4294967295, %s1640_s24   ;;  %s1362_s26 = sadd.s32 4294967294, %s1640_s24   ;;  %s1640_s24 = sphi %s1694_s24, %s2170_s24   ;;  %s1636_s23 = sphi %s1692_s23, %s2169_s23   ;;  %s1632_s22 = sphi %s1690_s22, %s2168_s22   ;;  %s1628_s21 = sphi %s1688_s21, %s2167_s21  }
   0x4   : > { %s1713_s27 = sadd.s32 1, %s1640_s24   ;;  %s157_s28 = sadd.s32 1, %s1636_s23 }
   0x5   : > { %s154_s29 = ssub.s32 %s1640_s24, %s1713_s27  ;;  %p167_p0 = scmp.ne.s32.totalorder %s1636_s23, %s1632_s22 }
   0x6   : > { %p155_p1 = scmp.eq.s32.totalorder %s154_s29, 0  ;;  %p168_p2 = scmp.eq.s32.totalorder %s1709_s25, 1 }
   0x7   : > { %p173_p3 = scmp.ne.s32.totalorder %s1632_s22, %s1628_s21  ;;  %p174_p4 = scmp.eq.s32.totalorder %s1362_s26, 1 }
   0x8   : > { %s1724_s30 = scalar_select %p155_p1, %s1636_s23, %s157_s28  }
   0x9   : > { %p1726_p5 = por %p168_p2, %p167_p0  ;;  %p1730_p6 = por %p174_p4, %p173_p3 }
   0xa   : > { %p1365_p7 = scmp.ge.s32.totalorder %s1640_s24, 1  ;;  %p215_p8 = scmp.lt.s32.totalorder %s1640_s24, 3 }
   0xc   : > { %p216_p9 = pnand %p1365_p7, %p215_p8 }
   0xd   : > { %p245_p10 = scmp.lt.s32.totalorder (!%p216_p9), %s1709_s25, 1  ;;  %v1568_v0 = vld [vmem:[%s2159_s1] sm:$0xff] (!%p216_p9)   ;;  %v1642_v1 = vmov (!%p216_p9), 0   ;;  %vm339_vm0 = vcmask (!%p216_p9), 293888   ;;  %v266_v3 = vld [vmem:[%s2160_s2 + $0x8] sm:$0xff] (!%p216_p9)  ;;  %v267_v4 = vld [vmem:[%s2160_s2 + $0x10] sm:$0xff] (!%p216_p9)  ;;  %v472_v19 = vlaneseq (!%p216_p9) }
   0xe   : > { %219 = sbr.rel (%p216_p9) target bundleno = 724 (0x2d4), region = 44  ;;  %388 = vmatprep.mubr.bf16.mxu0 (!%p216_p9), %v1642_v1  ;;  %1520 = vset.pattern.permute.xlu0 (!%p216_p9), %v1642_v1  ;;  %v265_v2 = vld [vmem:[%s2160_s2] sm:$0xff] (!%p216_p9)  ;;  %v268_v5 = vld [vmem:[%s2160_s2 + $0x18] sm:$0xff] (!%p216_p9)  ;;  %s1643_s9 = smov (!%p216_p9), 24   ;;  %vm346_vm1 = vcmask (!%p216_p9), 1041408   ;;  %v1569_v18 = vld [vmem:[%s2159_s1 + $0x8] sm:$0xff] (!%p216_p9)  }
   0xf   : > { %1439 = vmatprep.mubr.msk.bf16.mxu1 (!%p216_p9), %vm339_vm0, %v1568_v0  ;;  %1521 = vset.pattern.permute.xlu1 (!%p216_p9), %v1642_v1  ;;  %s1644_s12 = smov (!%p216_p9), 1   ;;  %s1645_s13 = smov (!%p216_p9), 25   ;;  %v473_v21 = vshrl.u32 (!%p216_p9), %v472_v19, 7  ;;  %v470_v24 = vld [vmem:[%s2163_s5] sm:$0x7] (!%p216_p9)  ;;  %vm547_vm2 = vcmask (!%p216_p9), 203776  }
  0x10   : > { %271 = vperm.xlu0 (!%p216_p9), %1520, %v265_v2   ;;  %281 = vperm.xlu1 (!%p216_p9), %1521, %v267_v4   ;;  %s1646_s14 = smov (!%p216_p9), 127   ;;  %s1647_s15 = smov (!%p216_p9), 23   ;;  %vm916_vm3 = vcmask (!%p216_p9), 842752   ;;  %vm598_vm4 = vcmask (!%p216_p9), 195584   ;;  %vm649_vm5 = vcmask (!%p216_p9), 187392   ;;  %vm700_vm6 = vcmask (!%p216_p9), 7168  }
  0x11   : > { %v474_v23 = vsub.s32 (!%p216_p9), 0, %v473_v21  ;;  %v478_v25 = vsub.s32 (!%p216_p9), 1, %v473_v21  ;;  %v482_v26 = vsub.s32 (!%p216_p9), 2, %v473_v21  ;;  %s1648_s18 = smov (!%p216_p9), 103   ;;  %s1649_s19 = smov (!%p216_p9), 105   ;;  %vm1051_vm7 = vcmask (!%p216_p9), 261120  }
  0x12   : > { %vm763_vm8 = vcmask (!%p216_p9), 1039360   ;;  %vm814_vm9 = vcmask (!%p216_p9), 859136   ;;  %vm865_vm10 = vcmask (!%p216_p9), 850944   ;;  %s1470_s16 = smul.u32 (!%p216_p9), 1536, %s1709_s25  ;;  %s1651_s28 = smov (!%p216_p9), [#allocation4]  }
  0x13   : > { %v475_v32 = vrot.slane (!%p216_p9), %v470_v24, %v474_v23  ;;  %v479_v37 = vrot.slane (!%p216_p9), %v470_v24, %v478_v25  ;;  %v483_v39 = vrot.slane (!%p216_p9), %v470_v24, %v482_v26  ;;  %v1872_v23 = vld [vmem:[%s2161_s3 + $0x4] ss:$12 sps:$4 sm:$0xff] (!%p216_p9)  }
  0x14   : > { %276 = vperm.xlu0 (!%p216_p9), %1520, %v266_v3   ;;  %286 = vperm.xlu1 (!%p216_p9), %1521, %v268_v5   ;;  %v997_v25 = vld [vmem:[%s2162_s4] sm:$0xff] (!%p216_p9)  ;;  %v999_v26 = vld [vmem:[%s2162_s4 + $0x10] sm:$0xff] (!%p216_p9) }
  0x15   : > { %s246_s11 = scalar_select %p245_p10, %s1709_s25, 1 }
  0x17   : > { %s1469_s20 = smul.u32 60, %s246_s11 }
  0x18   : > { %1528 = vrot.lane.b32.xlu1 %v1642_v1, %s1643_s9  ;;  %1523 = vrot.lane.b32.xlu0 %v1642_v1, %s1645_s13 }
  0x19   : > { %s249_s29 = scalar_lea.vmem %s2158_s0, %s1469_s20  ;;  %s1650_s20 = smov 104  }
  0x1a   : > { %v1557_v6 = vld [vmem:[%s249_s29 + $0x4] ss:$12 sps:$4 sm:$0xff]   ;;  %v1559_v7 = vld [vmem:[%s249_s29 + $0x8] ss:$12 sps:$4 sm:$0xff]   ;;  %v1560_v8 = vld [vmem:[%s249_s29] ss:$12 sps:$4 sm:$0xff]  }
  0x1b   : > { %356 = vmatprep.subr.bf16.mxu0 %v1557_v6  ;;  %1433 = vmatprep.subr.bf16.mxu1 %v1559_v7  ;;  %v1561_v9 = vld [vmem:[%s249_s29 + $0x1c] ss:$12 sps:$4 sm:$0xff]   ;;  %v1563_v10 = vld [vmem:[%s249_s29 + $0x20] ss:$12 sps:$4 sm:$0xff]   ;;  %v1564_v11 = vld [vmem:[%s249_s29 + $0x18] ss:$12 sps:$4 sm:$0xff]  }
  0x1c   : > { %357 = vmatpush1.bf16.msra.mxu0 %v1560_v8  ;;  %1434 = vmatpush3.bf16.msra.mxu1 %v1559_v7  ;;  %v263_v12 = vld [vmem:[%s249_s29 + $0x30] sm:$0x33]  ;;  %v1566_v14 = vld [vmem:[%s249_s29 + $0x38] ss:$0 sps:$4 sm:$0x33]   ;;  %s1582_s29 = sshll.u32 %s1651_s28, 4  ;;  %s1583_s29 = int_to_ptr.vmem [resolvable:$false] %s1582_s29 }
  0x1d   : > { %358 = vmatprep.subr.bf16.mxu0 %v1561_v9  ;;  %v1376_v13 = vcombine.high %v263_v12, %v263_v12  ;;  %v1375_v15 = vcombine.low %v263_v12, %v263_v12  ;;  %1435 = vmatprep.subr.bf16.mxu1 %v1563_v10  ;;  %v354_v17 = vsel %vm346_vm1, %v1566_v14, 0  ;;  %s1584_s10 = scalar_lea.vmem %s1583_s29, 3072 }
  0x1e   : > { %1538 = vrot.lane.b32.xlu1 %v1642_v1, %s1644_s12  ;;  %1533 = vrot.lane.b32.xlu0 %v1642_v1, %s1647_s15 }
  0x1f   : > { %v348_v16 = vsel %vm346_vm1, %v1375_v15, 0 }
  0x20   : > { %359 = vmatpush1.bf16.msra.mxu0 %v1564_v11  ;;  %1436 = vmatpush3.bf16.msra.mxu1 %v1563_v10 }
  0x21   : > { %1378 = vmatprep.subr.msk.bf16.mxu0 %vm346_vm1, %v1376_v13  ;;  %1467 = vmatprep.subr.msk.bf16.mxu1 %vm346_vm1, %v1566_v14 }
  0x22   : > { %1543 = vrot.lane.b32.xlu1 %v1642_v1, %s1646_s14 }
  0x24   : > { %361 = vmatpush1.bf16.msra.mxu0 %v348_v16  ;;  %1438 = vmatpush3.bf16.msra.mxu1 %v354_v17 }
  0x27   : > { %1379 = vmatmul.mubr.msk.bf16.vlgmr.msra.gmra.mrb[0].mxu0 %vm339_vm0, %v1568_v0  ;;  %1440 = vmatmul.mubr.msk.bf16.vlgmr.msra.gmra.mrb[0].mxu1 %vm339_vm0, %v1569_v18 }
  0x28   : > { %398 = vmatprep.mubr.bf16.mxu0 %v1642_v1  ;;  %1143 = vmatprep.mubr.bf16.mxu1 %v1642_v1 }
  0x2f   : > { %1380 = vmatmul.mubr.msk.bf16.gmra.mrb[4].mxu0 %vm339_vm0, %v1569_v18 }
  0x30   : > { %1090 = vmatprep.mubr.bf16.mxu0 %v1872_v23 }
  0x8f   : > { %v272_v20 = vpop.permute.xlu0 %271  ;;  %v282_v22 = vpop.permute.xlu1 %281 }
  0x93   : > { %v277_v27 = vpop.permute.xlu0 %276  ;;  %v287_v28 = vpop.permute.xlu1 %286 }
  0x97   : > { %v1886_v24 = vpop.permute.xlu1 %1528 }
  0xfa   : > { %v390_v29 = vpop.f32.mrb[0].mxu0  ;;  %v1441_v30 = vpop.f32.mrb[0].mxu1 }
  0xfb   : > { %v391_v31 = vadd.f32 %v390_v29, %v272_v20  ;;  %v392_v33 = vpop.f32.mrb[1].mxu0  ;;  %v443_v34 = vpop.f32.mrb[1].mxu1  ;;  %v452_v35 = vadd.f32 %v1441_v30, %v282_v22  ;;  %v998_v29 = vld [vmem:[%s2162_s4 + $0x8] sm:$0xff] }
  0xfc   : > { %v393_v36 = vadd.f32 %v392_v33, %v272_v20  ;;  %v444_v38 = vadd.f32 %v443_v34, %v272_v20  ;;  %v394_v40 = vpop.f32.mrb[2].mxu0  ;;  %v1442_v41 = vpop.f32.mrb[2].mxu1 }
  0xfd   : > { %v458_v42 = vmax.f32 %v391_v31, 0.0  ;;  %v466_v43 = vmax.f32 %v452_v35, 0.0  ;;  %v395_v44 = vadd.f32 %v394_v40, %v277_v27  ;;  %v396_v45 = vpop.f32.mrb[3].mxu0  ;;  %v446_v46 = vpop.f32.mrb[3].mxu1  ;;  %v455_v47 = vadd.f32 %v1442_v41, %v287_v28 }
  0xfe   : > { %v459_v48 = vmax.f32 %v393_v36, 0.0  ;;  %v460_v49 = vmax.f32 %v444_v38, 0.0  ;;  %v397_v50 = vadd.f32 %v396_v45, %v277_v27  ;;  %v447_v51 = vadd.f32 %v446_v46, %v277_v27  ;;  %v1895_v27 = vpop.permute.xlu1 %1538 }
  0xff   : > { %v495_v52 = vmul.f32 %v483_v39, %v466_v43  ;;  %v461_v53 = vmax.f32 %v395_v44, 0.0  ;;  %v469_v54 = vmax.f32 %v455_v47, 0.0  ;;  %v487_v57 = vmul.f32 %v475_v32, %v458_v42 }
 0x100   : > { %v462_v55 = vmax.f32 %v397_v50, 0.0  ;;  %v463_v56 = vmax.f32 %v447_v51, 0.0  ;;  %v488_v60 = vmul.f32 %v479_v37, %v459_v48  ;;  %v489_v61 = vmul.f32 %v483_v39, %v460_v49 }
 0x101   : > { %v490_v58 = vmul.f32 %v475_v32, %v461_v53  ;;  %v498_v59 = vmul.f32 %v483_v39, %v469_v54 }
 0x102   : > { %v491_v62 = vmul.f32 %v479_v37, %v462_v55  ;;  %v492_v63 = vmul.f32 %v483_v39, %v463_v56  ;;  %v400_v0 = vpop.f32.mrb[4].mxu0  ;;  %v1902_v30 = vpop.permute.xlu1 %1543 }
 0x103   : > { %v1781_v2 = vpack.c.bf16 %v490_v58, %v487_v57  ;;  %v1783_v3 = vpack.c.bf16 %v498_v59, %v495_v52  ;;  %v401_v4 = vadd.f32 %v400_v0, %v282_v22  ;;  %v402_v5 = vpop.f32.mrb[5].mxu0  ;;  %v1530_v0 = vunpack.i.l.bf16 %v1886_v24 }
 0x104   : > { %v1785_v6 = vpack.c.bf16 %v491_v62, %v488_v60  ;;  %v1787_v7 = vpack.c.bf16 %v492_v63, %v489_v61  ;;  %v403_v8 = vadd.f32 %v402_v5, %v282_v22  ;;  %v404_v9 = vpop.f32.mrb[6].mxu0 }
 0x105   : > { %v464_v10 = vmax.f32 %v401_v4, 0.0  ;;  %v405_v11 = vadd.f32 %v404_v9, %v287_v28  ;;  %v406_v12 = vpop.f32.mrb[7].mxu0  ;;  %584 = vrot.lane.b32.xlu1 %v1781_v2, %s1643_s9  ;;  %533 = vrot.lane.b32.xlu0 %v1781_v2, %s1645_s13 }
 0x106   : > { %v465_v13 = vmax.f32 %v403_v8, 0.0  ;;  %v407_v14 = vadd.f32 %v406_v12, %v287_v28  ;;  %v1524_v28 = vpop.permute.xlu0 %1523 }
 0x107   : > { %v493_v15 = vmul.f32 %v475_v32, %v464_v10  ;;  %v467_v16 = vmax.f32 %v405_v11, 0.0  ;;  %v1525_v43 = vunpack.i.l.bf16 %v1524_v28  ;;  %v1526_v58 = vunpack.i.h.bf16 %v1524_v28 }
 0x108   : > { %v494_v17 = vmul.f32 %v479_v37, %v465_v13  ;;  %v468_v18 = vmax.f32 %v407_v14, 0.0  ;;  %v1531_v10 = vunpack.i.h.bf16 %v1886_v24 }
 0x109   : > { %v496_v19 = vmul.f32 %v475_v32, %v467_v16  ;;  %900 = vrot.lane.b32.xlu1 %v1781_v2, %s1648_s18  ;;  %635 = vrot.lane.b32.xlu0 %v1781_v2, %s1647_s15  ;;  %v1000_v32 = vld [vmem:[%s2162_s4 + $0x18] sm:$0xff] }
 0x10a   : > { %v497_v20 = vmul.f32 %v479_v37, %v468_v18  ;;  %v1904_v31 = vpop.permute.xlu0 %1533 }
 0x10b   : > { %v1797_v21 = vpack.c.bf16 %v496_v19, %v493_v15  ;;  %v1535_v15 = vunpack.i.l.bf16 %v1904_v31 }
 0x10c   : > { %v1799_v22 = vpack.c.bf16 %v497_v20, %v494_v17  ;;  %v1536_v20 = vunpack.i.h.bf16 %v1904_v31 }
 0x10d   : > { %912 = vrot.lane.b32.xlu1 %v1783_v3, %s1648_s18  ;;  %586 = vrot.lane.b32.xlu0 %v1785_v6, %s1643_s9 }
 0x111   : > { %686 = vrot.lane.b32.xlu1 %v1781_v2, %s1644_s12  ;;  %904 = vrot.lane.b32.xlu0 %v1787_v7, %s1648_s18 }
 0x115   : > { %545 = vrot.lane.b32.xlu1 %v1783_v3, %s1645_s13  ;;  %688 = vrot.lane.b32.xlu0 %v1785_v6, %s1644_s12 }
 0x119   : > { %535 = vrot.lane.b32.xlu1 %v1785_v6, %s1645_s13  ;;  %537 = vrot.lane.b32.xlu0 %v1787_v7, %s1645_s13 }
 0x11d   : > { %637 = vrot.lane.b32.xlu1 %v1785_v6, %s1647_s15  ;;  %751 = vrot.lane.b32.xlu0 %v1787_v7, %s1646_s14 }
 0x121   : > { %902 = vrot.lane.b32.xlu1 %v1785_v6, %s1648_s18  ;;  %592 = vrot.lane.b32.xlu0 %v1797_v21, %s1643_s9 }
 0x125   : > { %541 = vrot.lane.b32.xlu1 %v1797_v21, %s1645_s13  ;;  %643 = vrot.lane.b32.xlu0 %v1797_v21, %s1647_s15 }
 0x129   : > { %694 = vrot.lane.b32.xlu1 %v1797_v21, %s1644_s12  ;;  %908 = vrot.lane.b32.xlu0 %v1797_v21, %s1648_s18 }
 0x12d   : > { %759 = vrot.lane.b32.xlu1 %v1783_v3, %s1646_s14  ;;  %543 = vrot.lane.b32.xlu0 %v1799_v22, %s1645_s13 }
 0x131   : > { %594 = vrot.lane.b32.xlu1 %v1799_v22, %s1643_s9  ;;  %588 = vrot.lane.b32.xlu0 %v1787_v7, %s1643_s9 }
 0x135   : > { %749 = vrot.lane.b32.xlu1 %v1785_v6, %s1646_s14  ;;  %596 = vrot.lane.b32.xlu0 %v1783_v3, %s1643_s9 }
 0x139   : > { %645 = vrot.lane.b32.xlu1 %v1799_v22, %s1647_s15  ;;  %747 = vrot.lane.b32.xlu0 %v1781_v2, %s1646_s14 }
 0x13d   : > { %802 = vrot.lane.b32.xlu1 %v1787_v7, %s1649_s19  ;;  %1548 = vrot.lane.b32.xlu0 %v1642_v1, %s1649_s19 }
 0x141   : > { %639 = vrot.lane.b32.xlu1 %v1787_v7, %s1647_s15  ;;  %910 = vrot.lane.b32.xlu0 %v1799_v22, %s1648_s18 }
 0x145   : > { %755 = vrot.lane.b32.xlu1 %v1797_v21, %s1646_s14  ;;  %696 = vrot.lane.b32.xlu0 %v1799_v22, %s1644_s12 }
 0x149   : > { %647 = vrot.lane.b32.xlu1 %v1783_v3, %s1647_s15  ;;  %810 = vrot.lane.b32.xlu0 %v1783_v3, %s1649_s19 }
 0x14d   : > { %798 = vrot.lane.b32.xlu1 %v1781_v2, %s1649_s19  ;;  %800 = vrot.lane.b32.xlu0 %v1785_v6, %s1649_s19 }
 0x151   : > { %1553 = vrot.lane.b32.xlu1 %v1642_v1, %s1650_s20  ;;  %853 = vrot.lane.b32.xlu0 %v1787_v7, %s1650_s20 }
 0x155   : > { %861 = vrot.lane.b32.xlu1 %v1783_v3, %s1650_s20  ;;  %757 = vrot.lane.b32.xlu0 %v1799_v22, %s1646_s14 }
 0x159   : > { %808 = vrot.lane.b32.xlu1 %v1799_v22, %s1649_s19  ;;  %690 = vrot.lane.b32.xlu0 %v1787_v7, %s1644_s12 }
 0x15d   : > { %851 = vrot.lane.b32.xlu1 %v1785_v6, %s1650_s20  ;;  %806 = vrot.lane.b32.xlu0 %v1797_v21, %s1649_s19  ;;  %s2107_s19 = scalar_lea.hbm %s2164_s6, %s1470_s16 }
 0x161   : > { %859 = vrot.lane.b32.xlu1 %v1799_v22, %s1650_s20  ;;  %698 = vrot.lane.b32.xlu0 %v1783_v3, %s1644_s12  ;;  %s242_s12 = sand.u32 1, %s1632_s22  }
 0x162   : > { %s1468_s14 = smul.u32 96, %s242_s12 }
 0x164   : > { %s2089_s15 = scalar_lea.vmem [#allocation4], %s1468_s14 }
 0x165   : > { %906 = vrot.lane.b32.xlu1 %v1642_v1, %s1648_s18  ;;  %849 = vrot.lane.b32.xlu0 %v1781_v2, %s1650_s20  ;;  %s1300_s17 = sshll.u32 %s2089_s15, 4  ;;  %s2109_s17 = int_to_ptr.vmem [resolvable:$true] %s1300_s17 }
 0x166   : > { %s1578_s26 = scalar_lea.vmem %s2109_s17, 1536  ;;  %p1585_p0 = scmp.lt.s32.totalorder %s2109_s17, %s1583_s29 }
 0x167   : > { %p1579_p11 = scmp.ne.s32.totalorder %s2109_s17, %s1578_s26  ;;  %p1586_p1 = scmp.lt.s32.totalorder %s1584_s10, %s1578_s26 }
 0x169   : > { %1003 = vperm.xlu1 %1521, %v997_v25   ;;  %857 = vrot.lane.b32.xlu0 %v1797_v21, %s1650_s20  ;;  %s2116_s20 = scalar_lea.sflag [#allocation5], %s242_s12  ;;  %p1580_p12 = pnand %p1579_p11, %p1726_p5 }
 0x16a   : > { %p1587_p2 = por %p1586_p1, %p1585_p0 }
 0x16b   : > { %p1581_p13 = pneg %p1580_p12 }
 0x16d   : > { %1013 = vperm.xlu1 %1521, %v999_v26   ;;  %914 = vrot.lane.b32.xlu0 %v1642_v1, %s1648_s18  ;;  %p1588_p3 = pnand %p1587_p2, %p1581_p13 }
 0x171   : > { %1008 = vperm.xlu0 %1520, %v998_v29   ;;  %v1540_v29 = vunpack.i.l.bf16 %v1895_v27 }
 0x175   : > { %1018 = vperm.xlu0 %1520, %v1000_v32  }
 0x177   : > { %v585_v33 = vpop.permute.xlu1 %584  ;;  %v534_v34 = vpop.permute.xlu0 %533 }
 0x178   : > { %v548_v47 = vsel %vm547_vm2, %v1525_v43, %v534_v34  ;;  %v599_v8 = vsel %vm598_vm4, %v1530_v0, %v585_v33  ;;  %v1541_v43 = vunpack.i.h.bf16 %v1895_v27 }
 0x17b   : > { %v901_v35 = vpop.permute.xlu1 %900  ;;  %v636_v36 = vpop.permute.xlu0 %635 }
 0x17c   : > { %v650_v18 = vsel %vm649_vm5, %v1535_v15, %v636_v36 }
 0x17f   : > { %v1909_v37 = vpop.permute.xlu1 %912  ;;  %v1911_v38 = vpop.permute.xlu0 %586 }
 0x180   : > { %v600_v63 = vsel %vm598_vm4, %v585_v33, %v1911_v38 }
 0x183   : > { %v1913_v39 = vpop.permute.xlu1 %686  ;;  %v1915_v40 = vpop.permute.xlu0 %904 }
 0x187   : > { %v1917_v41 = vpop.permute.xlu1 %545  ;;  %v1919_v42 = vpop.permute.xlu0 %688 }
 0x188   : > { %v702_v28 = vsel %vm700_vm6, %v1913_v39, %v1919_v42 }
 0x18b   : > { %v1921_v44 = vpop.permute.xlu1 %535  ;;  %v1923_v45 = vpop.permute.xlu0 %537 }
 0x18c   : > { %v549_v46 = vsel %vm547_vm2, %v534_v34, %v1921_v44 }
 0x18d   : > { %1058 = vmatprep.subr.bf16.mxu0 %v549_v46 }
 0x18e   : > { %1059 = vmatpush1.bf16.msra.mxu0 %v548_v47 }
 0x18f   : > { %v1928_v48 = vpop.permute.xlu1 %637  ;;  %v1930_v49 = vpop.permute.xlu0 %751 }
 0x190   : > { %v651_v14 = vsel %vm649_vm5, %v636_v36, %v1928_v48  ;;  %v1988_v36 = vld [vmem:[%s2161_s3 + $0x8] ss:$12 sps:$4 sm:$0xff]  }
 0x193   : > { %v903_v50 = vpop.permute.xlu1 %902  ;;  %v593_v51 = vpop.permute.xlu0 %592 }
 0x194   : > { %v917_v52 = vsel %vm916_vm3, %v901_v35, %v903_v50  ;;  %v918_v53 = vsel %vm916_vm3, %v903_v50, %v1915_v40  ;;  %v602_v13 = vsel %vm598_vm4, %v1531_v10, %v593_v51  ;;  %v701_v35 = vsel %vm700_vm6, %v1540_v29, %v1913_v39 }
 0x195   : > { %1111 = vmatprep.subr.bf16.mxu1 %v918_v53  ;;  %v550_v39 = vsel %vm547_vm2, %v1921_v44, %v1923_v45  ;;  %v2012_v45 = vld [vmem:[%s2161_s3 + $0x20] ss:$12 sps:$4 sm:$0xff]   ;;  %v1546_v53 = vunpack.i.h.bf16 %v1902_v30 }
 0x196   : > { %1112 = vmatpush1.bf16.msra.mxu1 %v917_v52  ;;  %v1545_v52 = vunpack.i.l.bf16 %v1902_v30 }
 0x197   : > { %v542_v54 = vpop.permute.xlu1 %541  ;;  %v644_v55 = vpop.permute.xlu0 %643 }
 0x198   : > { %v551_v62 = vsel %vm547_vm2, %v1526_v58, %v542_v54  ;;  %v653_v26 = vsel %vm649_vm5, %v1536_v20, %v644_v55  ;;  %v1572_v20 = vld [vmem:[%s2161_s3] ss:$12 sps:$4 sm:$0xff]  }
 0x19b   : > { %v695_v56 = vpop.permute.xlu1 %694  ;;  %v909_v57 = vpop.permute.xlu0 %908 }
 0x19f   : > { %v1935_v59 = vpop.permute.xlu1 %759  ;;  %v1937_v60 = vpop.permute.xlu0 %543 }
 0x1a0   : > { %v552_v61 = vsel %vm547_vm2, %v542_v54, %v1937_v60  ;;  %v553_v44 = vsel %vm547_vm2, %v1937_v60, %v1917_v41  ;;  %v769_v54 = vsel %vm763_vm8, %v1935_v59, %v1546_v53 }
 0x1a1   : > { %1060 = vmatprep.subr.bf16.mxu0 %v552_v61 }
 0x1a2   : > { %1061 = vmatpush1.bf16.msra.mxu0 %v551_v62 }
 0x1a3   : > { %v1945_v4 = vpop.permute.xlu1 %594  ;;  %1062 = vmatprep.subr.bf16.mxu0 %v600_v63  ;;  %v1947_v5 = vpop.permute.xlu0 %588 }
 0x1a4   : > { %v603_v9 = vsel %vm598_vm4, %v593_v51, %v1945_v4  ;;  %v704_v51 = vsel %vm700_vm6, %v1541_v43, %v695_v56  ;;  %v601_v41 = vsel %vm598_vm4, %v1911_v38, %v1947_v5 }
 0x1a6   : > { %1063 = vmatpush1.bf16.msra.mxu0 %v599_v8 }
 0x1a7   : > { %v1953_v11 = vpop.permute.xlu1 %749  ;;  %1064 = vmatprep.subr.bf16.mxu0 %v603_v9  ;;  %v1955_v12 = vpop.permute.xlu0 %596 }
 0x1aa   : > { %1065 = vmatpush1.bf16.msra.mxu0 %v602_v13 }
 0x1ab   : > { %v1961_v16 = vpop.permute.xlu1 %645  ;;  %1066 = vmatprep.subr.bf16.mxu0 %v651_v14  ;;  %v1963_v17 = vpop.permute.xlu0 %747 }
 0x1ac   : > { %v654_v19 = vsel %vm649_vm5, %v644_v55, %v1961_v16  ;;  %v604_v55 = vsel %vm598_vm4, %v1945_v4, %v1955_v12 }
 0x1ae   : > { %1067 = vmatpush1.bf16.msra.mxu0 %v650_v18 }
 0x1af   : > { %v1969_v24 = vpop.permute.xlu1 %802  ;;  %1068 = vmatprep.subr.bf16.mxu0 %v654_v19  ;;  %v1971_v25 = vpop.permute.xlu0 %1548 }
 0x1b0   : > { %v1551_v58 = vunpack.i.h.bf16 %v1971_v25 }
 0x1b2   : > { %1069 = vmatpush1.bf16.msra.mxu0 %v653_v26 }
 0x1b3   : > { %v1978_v32 = vpop.permute.xlu1 %639  ;;  %1070 = vmatprep.subr.bf16.mxu0 %v702_v28  ;;  %v911_v33 = vpop.permute.xlu0 %910 }
 0x1b4   : > { %v920_v31 = vsel %vm916_vm3, %v909_v57, %v911_v33  ;;  %v921_v34 = vsel %vm916_vm3, %v911_v33, %v1909_v37  ;;  %v652_v61 = vsel %vm649_vm5, %v1928_v48, %v1978_v32 }
 0x1b5   : > { %1113 = vmatprep.subr.bf16.mxu1 %v921_v34 }
 0x1b6   : > { %1071 = vmatpush1.bf16.msra.mxu0 %v701_v35  ;;  %1114 = vmatpush1.bf16.msra.mxu1 %v920_v31  ;;  %v1577_v31 = vld [vmem:[%s2161_s3 + $0x18] ss:$12 sps:$4 sm:$0xff]  }
 0x1b7   : > { %v756_v46 = vpop.permute.xlu1 %755  ;;  %1401 = vmatprep.subr.bf16.mxu1 %v1787_v7  ;;  %v1992_v47 = vpop.permute.xlu0 %696 }
 0x1b8   : > { %v705_v50 = vsel %vm700_vm6, %v695_v56, %v1992_v47 }
 0x1b9   : > { %1072 = vmatprep.subr.bf16.mxu0 %v705_v50  ;;  %1389 = vmatmul.mubr.msk.bf16.vlgmr.msra.gmra.mrb[4].mxu1 %vm1051_vm7, %v1988_v36 }
 0x1ba   : > { %1073 = vmatpush1.bf16.msra.mxu0 %v704_v51  ;;  %1402 = vmatpush3.bf16.msra.mxu1 %v550_v39 }
 0x1bb   : > { %v648_v27 = vpop.permute.xlu1 %647  ;;  %1074 = vmatprep.subr.bf16.mxu0 %v1785_v6  ;;  %1403 = vmatprep.subr.bf16.mxu1 %v1783_v3  ;;  %v811_v7 = vpop.permute.xlu0 %810  ;;  %v766_v3 = vsel %vm763_vm8, %v1930_v49, %v1545_v52 }
 0x1bc   : > { %1153 = vmatprep.mubr.bf16.mxu1 %v1642_v1  ;;  %v820_v0 = vsel %vm814_vm9, %v811_v7, %v1551_v58 }
 0x1be   : > { %1075 = vmatpush1.bf16.msra.mxu0 %v1781_v2  ;;  %1404 = vmatpush3.bf16.msra.mxu1 %v553_v44  ;;  %v1550_v2 = vunpack.i.l.bf16 %v1971_v25  ;;  %v1575_v25 = vld [vmem:[%s2161_s3 + $0x1c] ss:$12 sps:$4 sm:$0xff]  }
 0x1bf   : > { %v799_v6 = vpop.permute.xlu1 %798  ;;  %1076 = vmatprep.subr.bf16.mxu0 %v1799_v22  ;;  %1405 = vmatprep.subr.bf16.mxu1 %v766_v3  ;;  %v801_v1 = vpop.permute.xlu0 %800  ;;  %v765_v22 = vsel %vm763_vm8, %v1953_v11, %v1930_v49 }
 0x1c0   : > { %v817_v49 = vsel %vm814_vm9, %v1969_v24, %v1550_v2  ;;  %v816_v63 = vsel %vm814_vm9, %v801_v1, %v1969_v24  ;;  %v815_v8 = vsel %vm814_vm9, %v799_v6, %v801_v1 }
 0x1c1   : > { %1390 = vmatmul.mubr.msk.bf16.gmra.mrb[8].mxu1 %vm1051_vm7, %v2012_v45 }
 0x1c2   : > { %1077 = vmatpush1.bf16.msra.mxu0 %v1797_v21  ;;  %1406 = vmatpush3.bf16.msra.mxu1 %v601_v41  ;;  %v764_v21 = vsel %vm763_vm8, %v1963_v17, %v1953_v11 }
 0x1c3   : > { %v1554_v30 = vpop.permute.xlu1 %1553  ;;  %1078 = vmatprep.subr.bf16.mxu0 %v765_v22  ;;  %1407 = vmatprep.subr.bf16.mxu1 %v769_v54  ;;  %v854_v38 = vpop.permute.xlu0 %853 }
 0x1c4   : > { %1196 = vmatprep.mubr.bf16.mxu1 %v1872_v23  ;;  %v1555_v62 = vunpack.i.l.bf16 %v1554_v30  ;;  %v1556_v48 = vunpack.i.h.bf16 %v1554_v30 }
 0x1c6   : > { %1079 = vmatpush1.bf16.msra.mxu0 %v764_v21  ;;  %1408 = vmatpush3.bf16.msra.mxu1 %v604_v55  ;;  %v868_v10 = vsel %vm865_vm10, %v854_v38, %v1555_v62 }
 0x1c7   : > { %v862_v56 = vpop.permute.xlu1 %861  ;;  %v758_v57 = vpop.permute.xlu0 %757  ;;  %1409 = vmatprep.subr.bf16.mxu1 %v817_v49 }
 0x1c8   : > { %v767_v23 = vsel %vm763_vm8, %v756_v46, %v758_v57  ;;  %v768_v60 = vsel %vm763_vm8, %v758_v57, %v1935_v59  ;;  %v655_v59 = vsel %vm649_vm5, %v1961_v16, %v648_v27  ;;  %v871_v16 = vsel %vm865_vm10, %v862_v56, %v1556_v48 }
 0x1c9   : > { %1080 = vmatprep.subr.bf16.mxu0 %v768_v60 }
 0x1ca   : > { %1081 = vmatpush1.bf16.msra.mxu0 %v767_v23  ;;  %1410 = vmatpush3.bf16.msra.mxu1 %v652_v61 }
 0x1cb   : > { %v809_v4 = vpop.permute.xlu1 %808  ;;  %1082 = vmatprep.subr.bf16.mxu0 %v816_v63  ;;  %v691_v5 = vpop.permute.xlu0 %690  ;;  %1411 = vmatprep.subr.bf16.mxu1 %v820_v0 }
 0x1cc   : > { %v819_v9 = vsel %vm814_vm9, %v809_v4, %v811_v7  ;;  %v703_v14 = vsel %vm700_vm6, %v1919_v42, %v691_v5 }
 0x1ce   : > { %1083 = vmatpush1.bf16.msra.mxu0 %v815_v8  ;;  %1412 = vmatpush3.bf16.msra.mxu1 %v655_v59 }
 0x1cf   : > { %v852_v11 = vpop.permute.xlu1 %851  ;;  %1084 = vmatprep.subr.bf16.mxu0 %v819_v9  ;;  %v807_v12 = vpop.permute.xlu0 %806  ;;  %1413 = vmatprep.subr.bf16.mxu1 %v868_v10 }
 0x1d0   : > { %v818_v13 = vsel %vm814_vm9, %v807_v12, %v809_v4  ;;  %v867_v15 = vsel %vm865_vm10, %v852_v11, %v854_v38 }
 0x1d2   : > { %1085 = vmatpush1.bf16.msra.mxu0 %v818_v13  ;;  %1414 = vmatpush3.bf16.msra.mxu1 %v703_v14 }
 0x1d3   : > { %v860_v17 = vpop.permute.xlu1 %859  ;;  %1086 = vmatprep.subr.bf16.mxu0 %v867_v15  ;;  %v699_v18 = vpop.permute.xlu0 %698  ;;  %1415 = vmatprep.subr.bf16.mxu1 %v871_v16 }
 0x1d4   : > { %v706_v19 = vsel %vm700_vm6, %v1992_v47, %v699_v18  ;;  %v870_v29 = vsel %vm865_vm10, %v860_v17, %v862_v56 }
 0x1d6   : > { %1416 = vmatpush3.bf16.msra.mxu1 %v706_v19 }
 0x1d7   : > { %v907_v24 = vpop.permute.xlu1 %906  ;;  %v850_v42 = vpop.permute.xlu0 %849 }
 0x1d8   : > { %v866_v26 = vsel %vm865_vm10, %v850_v42, %v852_v11  ;;  %v919_v28 = vsel %vm916_vm3, %v1915_v40, %v907_v24 }
 0x1d9   : > { %1087 = vmatpush1.bf16.msra.mxu0 %v866_v26  ;;  %1197 = vmatmul.mubr.bf16.vlgmr.msra.gmra.mrb[12].mxu1 %v1572_v20 }
 0x1da   : > { %1443 = vmatprep.subr.bf16.mxu1 %v919_v28  ;;  %1088 = vmatprep.subr.bf16.mxu0 %v870_v29 }
 0x1db   : > { %1444 = vmatpush3.bf16.msra.mxu1 %v919_v28  ;;  %v858_v32 = vpop.permute.xlu0 %857  ;;  %1204 = vmatprep.mubr.bf16.mxu1 %v1575_v25 }
 0x1dc   : > { %v869_v33 = vsel %vm865_vm10, %v858_v32, %v860_v17 }
 0x1dd   : > { %1089 = vmatpush1.bf16.msra.mxu0 %v869_v33 }
 0x1df   : > { %v915_v34 = vpop.permute.xlu0 %914 }
 0x1e0   : > { %1091 = vmatmul.mubr.bf16.vlgmr.msra.gmra.mrb[8].mxu0 %v1572_v20  ;;  %v922_v40 = vsel %vm916_vm3, %v1909_v37, %v915_v34 }
 0x1e1   : > { %1205 = vmatmul.mubr.bf16.gmra.mrb[16].mxu1 %v1577_v31  ;;  %1445 = vmatprep.subr.bf16.mxu1 %v922_v40 }
 0x1e2   : > { %1446 = vmatpush3.bf16.msra.mxu1 %v922_v40  ;;  %1100 = vmatprep.mubr.bf16.mxu0 %v1575_v25 }
 0x1e3   : > { %1447 = vmatprep.mubr.msk.bf16.mxu1 %vm1051_vm7, %v1988_v36 }
 0x1e8   : > { %1101 = vmatmul.mubr.bf16.gmra.mrb[12].mxu0 %v1577_v31  ;;  %v1004_v6 = vpop.permute.xlu1 %1003 }
 0x1e9   : > { %1448 = vmatmul.mubr.msk.bf16.vlgmr.msra.gmra.mrb[20].mxu1 %vm1051_vm7, %v2012_v45 }
 0x1ec   : > { %v1014_v4 = vpop.permute.xlu1 %1013 }
 0x1f0   : > { %v1009_v45 = vpop.permute.xlu0 %1008 }
 0x1f4   : > { %v1019_v59 = vpop.permute.xlu0 %1018 }
 0x28c   : > { %v1145_v35 = vpop.f32.mrb[4].mxu1 }
 0x28d   : > { %v1147_v43 = vpop.f32.mrb[5].mxu1 }
 0x28e   : > { %v1149_v46 = vpop.f32.mrb[6].mxu1 }
 0x28f   : > { %v1151_v47 = vpop.f32.mrb[7].mxu1 }
 0x294   : > { %v1155_v50 = vpop.f32.mrb[8].mxu1 }
 0x295   : > { %v1157_v39 = vpop.f32.mrb[9].mxu1 }
 0x296   : > { %v2082_v37 = vpop.f32.mrb[10].mxu1 }
 0x297   : > { %v2084_v51 = vpop.f32.mrb[11].mxu1 }
 0x2ac   : > { %v1417_v27 = vpop.f32.mrb[12].mxu1 }
 0x2ad   : > { %v1418_v7 = vpop.f32.mrb[13].mxu1 }
 0x2ae   : > { %v1419_v52 = vadd.f32 %v1418_v7, %v1417_v27  ;;  %v1420_v36 = vpop.f32.mrb[14].mxu1 }
 0x2af   : > { %v1421_v44 = vpop.f32.mrb[15].mxu1 }
 0x2b0   : > { %v1422_v3 = vadd.f32 %v1421_v44, %v1420_v36  ;;  %v1199_v13 = vadd.f32 %v1419_v52, %v1004_v6 }
 0x2b2   : > { %v1202_v26 = vadd.f32 %v1422_v3, %v1009_v45 }
 0x2b3   : > { %v1092_v1 = vpop.f32.mrb[8].mxu0 }
 0x2b4   : > { %v1093_v53 = vadd.f32 %v1092_v1, %v1004_v6  ;;  %v1094_v41 = vpop.f32.mrb[9].mxu0  ;;  %v1423_v2 = vpop.f32.mrb[16].mxu1 }
 0x2b5   : > { %v1095_v22 = vadd.f32 %v1094_v41, %v1004_v6  ;;  %v1096_v54 = vpop.f32.mrb[10].mxu0  ;;  %v1424_v30 = vpop.f32.mrb[17].mxu1 }
 0x2b6   : > { %v1146_v38 = vadd.f32 %v1145_v35, %v1093_v53  ;;  %v1097_v55 = vadd.f32 %v1096_v54, %v1009_v45  ;;  %v1425_v21 = vadd.f32 %v1424_v30, %v1423_v2  ;;  %v1098_v49 = vpop.f32.mrb[11].mxu0  ;;  %v1426_v56 = vpop.f32.mrb[18].mxu1 }
 0x2b7   : > { %v1148_v57 = vadd.f32 %v1147_v43, %v1095_v22  ;;  %v1099_v58 = vadd.f32 %v1098_v49, %v1009_v45  ;;  %v1427_v23 = vpop.f32.mrb[19].mxu1 }
 0x2b8   : > { %v1262_v60 = vmax.f32 %v1146_v38, 0.0  ;;  %v1150_v61 = vadd.f32 %v1149_v46, %v1097_v55  ;;  %v1428_v62 = vadd.f32 %v1427_v23, %v1426_v56  ;;  %v1207_v9 = vadd.f32 %v1425_v21, %v1014_v4 }
 0x2b9   : > { %v1263_v63 = vmax.f32 %v1148_v57, 0.0  ;;  %v1152_v0 = vadd.f32 %v1151_v47, %v1099_v58 }
 0x2ba   : > { %1274 = vst [vmem:[%s2089_s15] sm:$0xff] %v1262_v60  ;;  %v1265_v5 = vmax.f32 %v1150_v61, 0.0  ;;  %v1210_v18 = vadd.f32 %v1428_v62, %v1019_v59 }
 0x2bb   : > { %1275 = vst [vmem:[%s2089_s15 + $0x8] sm:$0xff] %v1263_v63  ;;  %v1266_v8 = vmax.f32 %v1152_v0, 0.0  ;;  %v1102_v48 = vpop.f32.mrb[12].mxu0 }
 0x2bc   : > { %1277 = vst [vmem:[%s2089_s15 + $0x18] sm:$0xff] %v1265_v5  ;;  %v1103_v10 = vadd.f32 %v1102_v48, %v1014_v4  ;;  %v1104_v11 = vpop.f32.mrb[13].mxu0  ;;  %v1449_v12 = vpop.f32.mrb[20].mxu1 }
 0x2bd   : > { %1278 = vst [vmem:[%s2089_s15 + $0x20] sm:$0xff] %v1266_v8  ;;  %v1105_v14 = vadd.f32 %v1104_v11, %v1014_v4  ;;  %v1256_v15 = vadd.f32 %v1449_v12, %v1207_v9  ;;  %v1106_v16 = vpop.f32.mrb[14].mxu0  ;;  %v1247_v17 = vpop.f32.mrb[21].mxu1 }
 0x2be   : > { %v1156_v19 = vadd.f32 %v1155_v50, %v1103_v10  ;;  %v1107_v20 = vadd.f32 %v1106_v16, %v1019_v59  ;;  %v1248_v24 = vadd.f32 %v1247_v17, %v1199_v13  ;;  %v1108_v42 = vpop.f32.mrb[15].mxu0  ;;  %v1450_v25 = vpop.f32.mrb[22].mxu1 }
 0x2bf   : > { %v1158_v28 = vadd.f32 %v1157_v39, %v1105_v14  ;;  %v1270_v29 = vmax.f32 %v1256_v15, 0.0  ;;  %v1109_v32 = vadd.f32 %v1108_v42, %v1019_v59  ;;  %v1259_v33 = vadd.f32 %v1450_v25, %v1210_v18  ;;  %v1250_v31 = vpop.f32.mrb[23].mxu1 }
 0x2c0   : > { %v1268_v34 = vmax.f32 %v1156_v19, 0.0  ;;  %v1160_v40 = vadd.f32 %v2082_v37, %v1107_v20  ;;  %v1264_v35 = vmax.f32 %v1248_v24, 0.0  ;;  %v1251_v43 = vadd.f32 %v1250_v31, %v1202_v26 }
 0x2c1   : > { %v1269_v46 = vmax.f32 %v1158_v28, 0.0  ;;  %1282 = vst [vmem:[%s2089_s15 + $0x40] sm:$0xff] %v1270_v29  ;;  %v1162_v47 = vadd.f32 %v2084_v51, %v1109_v32  ;;  %v1273_v50 = vmax.f32 %v1259_v33, 0.0 }
 0x2c2   : > { %1280 = vst [vmem:[%s2089_s15 + $0x30] sm:$0xff] %v1268_v34  ;;  %v1271_v39 = vmax.f32 %v1160_v40, 0.0  ;;  %1276 = vst [vmem:[%s2089_s15 + $0x10] sm:$0xff] %v1264_v35  ;;  %v1267_v27 = vmax.f32 %v1251_v43, 0.0 }
 0x2c3   : > { %1281 = vst [vmem:[%s2089_s15 + $0x38] sm:$0xff] %v1269_v46  ;;  %v1272_v7 = vmax.f32 %v1162_v47, 0.0  ;;  %1285 = vst [vmem:[%s2089_s15 + $0x58] sm:$0xff] %v1273_v50 }
 0x2c4   : > { %1283 = vst [vmem:[%s2089_s15 + $0x48] sm:$0xff] %v1271_v39  ;;  %1279 = vst [vmem:[%s2089_s15 + $0x28] sm:$0xff] %v1267_v27 }
 0x2c5   : > { %1284 = vst [vmem:[%s2089_s15 + $0x50] sm:$0xff] %v1272_v7 }
 0x2c6   : > { %1591 = shalt.err (!%p1588_p3)
}
 0x2c7   : > { %s1592_s11 = scalar_lea.hbm %s2107_s19, 1536  ;;  %s1596_s14 = scalar_lea.hbm %s2164_s6, 3072 }
 0x2c8   : > { %p1593_p4 = scmp.ne.s32.totalorder %s2107_s19, %s1592_s11  ;;  %p1597_p9 = scmp.lt.u32.totalorder %s2107_s19, %s2164_s6 }
 0x2c9   : > { %p1598_p10 = scmp.lt.u32.totalorder %s1596_s14, %s1592_s11  ;;  %p1600_p12 = scmp.lt.u32.totalorder %s1592_s11, %s2107_s19 }
 0x2ca   : > { %p1594_p7 = pnand %p1593_p4, %p1726_p5 }
 0x2cb   : > { %p1599_p11 = por %p1598_p10, %p1597_p9 }
 0x2cc   : > { %p1595_p8 = pneg %p1594_p7 }
 0x2cd   : > { %p1601_p13 = por %p1600_p12, %p1599_p11 }
 0x2cf   : > { %p1602_p0 = pnand %p1601_p13, %p1595_p8 }
 0x2d1   : > { %1605 = shalt.err (!%p1602_p0)
}
 0x2d2   : > { %s1652_s25 = smov 384  }
 0x2d3   : > { %1471 = dma.vmem_to_hbm [thread:$0]  (%p1726_p5), %s2109_s17, 1536, %s2107_s19, %s2116_s20, %s1652_s25, %s1652_s25, %s1643_s9  }
 0x2d4 PF: > { %p1477_p1 = scmp.ge.s32.totalorder %s1640_s24, 2  ;;  %s1315_s18 = sand.u32 1, %s1628_s21  }
 0x2d5   : > { %s1316_s26 = scalar_lea.sflag [#allocation5], %s1315_s18 }
 0x2d6   : > { %p1474_p2 = pnand %p1477_p1, %p1730_p6 }
 0x2d8   : > { %1623 = dma.done.wait (!%p1474_p2), %s1316_s26, 1536  }
 0x2d9   : > { %1625 = vsyncadd (!%p1474_p2), %s1316_s26, 4294965760  ;;  %p16_p3 = scmp.ge.s32.totalorder %s1713_s27, 4   ;;  %s2167_s21 = smov %s1632_s22 }
 0x2da   : > { %s2168_s22 = smov %s1636_s23  ;;  %s2169_s23 = smov %s1724_s30 }
 0x2db   : > { %s2170_s24 = smov %s1713_s27  ;;  %18 = sbr.rel (!%p16_p3) target bundleno = 3 (0x3), region = 79 }
 0x2e2   :  { %1321 = vsyncpa [#allocation5], 1 }
 0x2e3   :  { %1323 = vsyncpa [#allocation5 + $0x1], 1 }

</bundles_post_ra>
